<compile_context>
chip_gen: v7x
topology: tpu7x:2x2x1
jax: 0.10.0
libtpu: 0.0.40
codegen_flags: <defaults>
</compile_context>

<pallas_src>
import jax
import jax.numpy as jnp
from jax.experimental import pallas as pl
from jax.experimental.pallas import tpu as pltpu


def _lstm_cell_kernel(xh_ref, w_ref, b_ref, c_ref, h_out_ref, c_out_ref):
    """One hidden-column tile of the LSTM cell.

    xh_ref : (B, K)        bf16  packed [x, h] activations (K = input + hidden)
    w_ref  : (4, K, Ht)    bf16  packed [W_ih; W_hh], gate-major leading axis
    b_ref  : (4, 1, Ht)    f32   b_ih + b_hh, gate-major
    c_ref  : (B, Ht)       f32
    h_out  : (B, Ht)       f32
    c_out  : (B, Ht)       f32
    Gate order along the leading weight axis is [i, f, g, o] (torch LSTMCell).
    """
    xh = xh_ref[...]
    # Four (B, K) @ (K, Ht) MXU matmuls (one per gate); bf16 inputs, f32 accum.
    pre = [
        jnp.dot(xh, w_ref[g], preferred_element_type=jnp.float32) + b_ref[g]
        for g in range(4)
    ]
    i_gate = jax.nn.sigmoid(pre[0])
    f_gate = jax.nn.sigmoid(pre[1])
    g_gate = jnp.tanh(pre[2])
    o_gate = jax.nn.sigmoid(pre[3])

    c_new = f_gate * c_ref[...] + i_gate * g_gate
    h_new = o_gate * jnp.tanh(c_new)

    h_out_ref[...] = h_new.astype(h_out_ref.dtype)
    c_out_ref[...] = c_new.astype(c_out_ref.dtype)


def prepare_lstm_params(w_ih, w_hh, b_ih, b_hh, compute_dtype=jnp.bfloat16):
    """One-time parameter prep (hoisted out of the per-call path).

    torch layout in : w_ih (4H, in), w_hh (4H, H), b_ih / b_hh (4H,)
    kernel layout out: W (4, in+H, H) compute_dtype, b (4, 1, H) float32
    """
    four_h, in_features = w_ih.shape
    hidden = four_h // 4
    w_ih_g = jnp.transpose(
        jnp.reshape(jnp.asarray(w_ih, jnp.float32), (4, hidden, in_features)),
        (0, 2, 1))                                              # (4, in, H)
    w_hh_g = jnp.transpose(
        jnp.reshape(jnp.asarray(w_hh, jnp.float32), (4, hidden, hidden)),
        (0, 2, 1))                                              # (4, H, H)
    w_packed = jnp.concatenate([w_ih_g, w_hh_g], axis=1).astype(compute_dtype)
    b_packed = (jnp.asarray(b_ih, jnp.float32)
                + jnp.asarray(b_hh, jnp.float32)).reshape(4, 1, hidden)
    return w_packed, b_packed


def _pick_h_tile(hidden):
    for t in (512, 256, 128):
        if hidden % t == 0:
            return t
    return hidden  # small / odd hidden: single full-width tile


def lstm_decompose_forward(x, hx, c, w_packed, b_packed):
    """Pallas LSTMCell step.  Returns (h_new, c_new), each (B, hidden) f32."""
    B = x.shape[0]
    hidden = c.shape[-1]
    k_total = w_packed.shape[1]
    compute_dtype = w_packed.dtype

    # Packed [x, h] activation: tiny (B x K) vs. the weights; concat + cast are
    # fused by XLA and are not on the weight-bandwidth critical path.
    xh = jnp.concatenate(
        [jnp.asarray(x, jnp.float32), jnp.asarray(hx, jnp.float32)], axis=-1
    ).astype(compute_dtype)
    c = jnp.asarray(c, jnp.float32)

    tile_h = _pick_h_tile(hidden)
    num_h_tiles = hidden // tile_h

    # Explicit VMEM budget (BlockSpec double-buffers every operand).
    est = 2 * (
        B * k_total * 2                 # xh (bf16)
        + 4 * k_total * tile_h * 2      # weight tile (bf16)
        + 4 * 8 * tile_h * 4            # bias tile (f32, sublane-padded)
        + B * tile_h * 4                # c tile
        + 2 * B * tile_h * 4            # h_out, c_out tiles
    )
    vmem_limit = min(max(est + (1 << 20), 4 << 20), 64 << 20)

    h_new, c_new = pl.pallas_call(
        _lstm_cell_kernel,
        out_shape=(
            jax.ShapeDtypeStruct((B, hidden), jnp.float32),
            jax.ShapeDtypeStruct((B, hidden), jnp.float32),
        ),
        grid=(num_h_tiles,),
        in_specs=[
            pl.BlockSpec((B, k_total), lambda j: (0, 0)),
            pl.BlockSpec((4, k_total, tile_h), lambda j: (0, 0, j)),
            pl.BlockSpec((4, 1, tile_h), lambda j: (0, 0, j)),
            pl.BlockSpec((B, tile_h), lambda j: (0, j)),
        ],
        out_specs=(
            pl.BlockSpec((B, tile_h), lambda j: (0, j)),
            pl.BlockSpec((B, tile_h), lambda j: (0, j)),
        ),
        compiler_params=pltpu.CompilerParams(
            dimension_semantics=("parallel",),
            vmem_limit_bytes=vmem_limit,
        ),
    )(xh, w_packed, b_packed, c)
    return h_new, c_new


def _reference_f32(x, hx, c, w_ih, w_hh, b_ih, b_hh):
    gates = x @ w_ih.T + b_ih + hx @ w_hh.T + b_hh
    i, f, g, o = jnp.split(gates, 4, axis=-1)
    i = jax.nn.sigmoid(i)
    f = jax.nn.sigmoid(f)
    g = jnp.tanh(g)
    o = jax.nn.sigmoid(o)
    c_new = f * c + i * g
    return o * jnp.tanh(c_new), c_new


def _reference_bf16_matmul(x, hx, c, w_ih, w_hh, b_ih, b_hh):
    # Mirrors the kernel's bf16 matmul inputs / f32 accumulation exactly.
    xh = jnp.concatenate([x, hx], axis=-1).astype(jnp.bfloat16)
    w = jnp.concatenate([w_ih, w_hh], axis=1).T.astype(jnp.bfloat16)  # (K, 4H)
    gates = jnp.dot(xh, w, preferred_element_type=jnp.float32) + (b_ih + b_hh)
    i, f, g, o = jnp.split(gates, 4, axis=-1)
    i = jax.nn.sigmoid(i)
    f = jax.nn.sigmoid(f)
    g = jnp.tanh(g)
    o = jax.nn.sigmoid(o)
    c_new = f * c + i * g
    return o * jnp.tanh(c_new), c_new


if __name__ == "__main__":
    batch = 16          # multiple of 16 -> clean bf16 sublane packing
    input_size = 128    # multiple of 128 -> lane-dense blocks
    hidden = 128        # multiple of 128 -> aligned gate boundaries / stores

    key = jax.random.PRNGKey(0)
    kx, kh, kc, k1, k2, k3, k4 = jax.random.split(key, 7)

    x = jax.random.normal(kx, (batch, input_size), jnp.float32)
    hx = jax.random.normal(kh, (batch, hidden), jnp.float32)
    c = jax.random.normal(kc, (batch, hidden), jnp.float32)

    # Deterministic "LSTMCell" parameters (torch layout: (4H, in), (4H, H), (4H,))
    scale = 1.0 / jnp.sqrt(hidden)
    w_ih = jax.random.uniform(k1, (4 * hidden, input_size), jnp.float32,
                              -scale, scale)
    w_hh = jax.random.uniform(k2, (4 * hidden, hidden), jnp.float32,
                              -scale, scale)
    b_ih = jax.random.uniform(k3, (4 * hidden,), jnp.float32, -scale, scale)
    b_hh = jax.random.uniform(k4, (4 * hidden,), jnp.float32, -scale, scale)

    # One-time parameter prep (NOT in the per-call path).
    w_packed, b_packed = prepare_lstm_params(w_ih, w_hh, b_ih, b_hh)
    jax.block_until_ready((w_packed, b_packed))

    h_new, c_new = lstm_decompose_forward(x, hx, c, w_packed, b_packed)
    jax.block_until_ready((h_new, c_new))

    # Tight check against a reference that mirrors the bf16-matmul / f32-accum.
    h_ref, c_ref = _reference_bf16_matmul(x, hx, c, w_ih, w_hh, b_ih, b_hh)
    assert jnp.allclose(h_new, h_ref, atol=1e-4, rtol=1e-3)
    assert jnp.allclose(c_new, c_ref, atol=1e-4, rtol=1e-3)

    # Loose sanity check against the pure-f32 PyTorch-equivalent math.
    h_f32, c_f32 = _reference_f32(x, hx, c, w_ih, w_hh, b_ih, b_hh)
    assert jnp.allclose(h_new, h_f32, atol=3e-2, rtol=3e-2)
    assert jnp.allclose(c_new, c_f32, atol=3e-2, rtol=3e-2)

    print("KERNEL_OK")
</pallas_src>

<mosaic_0001>
module attributes {stable_mosaic.version = 11 : i64} {
  func.func @_lstm_cell_kernel(%arg0: i32, %arg1: memref<16x256xbf16, #tpu.memory_space<vmem>>, %arg2: memref<4x256x128xbf16, #tpu.memory_space<vmem>>, %arg3: memref<4x1x128xf32, #tpu.memory_space<vmem>>, %arg4: memref<16x128xf32, #tpu.memory_space<vmem>>, %arg5: memref<16x128xf32, #tpu.memory_space<vmem>>, %arg6: memref<16x128xf32, #tpu.memory_space<vmem>>) attributes {dimension_semantics = [#tpu.dimension_semantics<parallel>], iteration_bounds = array<i64: 1>, scalar_prefetch = 0 : i64, scratch_operands = 0 : i64, tpu.core_type = #tpu.core_type<tc>, window_params = [{pipeline_mode = #tpu.pipeline_mode<synchronous>, transform_indices = @transform_0, window_bounds = array<i64: 16, 256>}, {transform_indices = @transform_1, window_bounds = array<i64: 4, 256, 128>}, {transform_indices = @transform_2, window_bounds = array<i64: 4, 1, 128>}, {transform_indices = @transform_3, window_bounds = array<i64: 16, 128>}, {transform_indices = @transform_4, window_bounds = array<i64: 16, 128>}, {transform_indices = @transform_5, window_bounds = array<i64: 16, 128>}]} {
    %c0 = arith.constant 0 : index
    %c0_0 = arith.constant 0 : index
    %0 = vector.load %arg1[%c0, %c0_0] : memref<16x256xbf16, #tpu.memory_space<vmem>>, vector<16x256xbf16>
    %c0_1 = arith.constant 0 : index
    %c0_2 = arith.constant 0 : index
    %c0_3 = arith.constant 0 : index
    %1 = vector.load %arg2[%c0_1, %c0_2, %c0_3] : memref<4x256x128xbf16, #tpu.memory_space<vmem>>, vector<1x256x128xbf16>
    %2 = vector.shape_cast %1 : vector<1x256x128xbf16> to vector<256x128xbf16>
    %cst = arith.constant dense<0.000000e+00> : vector<16x128xf32>
    %3 = tpu.matmul %0, %2, %cst {dimension_numbers = #tpu.dot_dimension_numbers<[1], [0], [0], [1], [0, 0, 1, 1], [], []>} : vector<16x256xbf16>, vector<256x128xbf16>, vector<16x128xf32> -> vector<16x128xf32>
    %c0_4 = arith.constant 0 : index
    %c0_5 = arith.constant 0 : index
    %c0_6 = arith.constant 0 : index
    %4 = vector.load %arg3[%c0_4, %c0_5, %c0_6] : memref<4x1x128xf32, #tpu.memory_space<vmem>>, vector<1x1x128xf32>
    %5 = vector.shape_cast %4 : vector<1x1x128xf32> to vector<1x128xf32>
    %6 = vector.broadcast %5 : vector<1x128xf32> to vector<16x128xf32>
    %7 = arith.addf %3, %6 : vector<16x128xf32>
    %c1 = arith.constant 1 : index
    %c0_7 = arith.constant 0 : index
    %c0_8 = arith.constant 0 : index
    %8 = vector.load %arg2[%c1, %c0_7, %c0_8] : memref<4x256x128xbf16, #tpu.memory_space<vmem>>, vector<1x256x128xbf16>
    %9 = vector.shape_cast %8 : vector<1x256x128xbf16> to vector<256x128xbf16>
    %cst_9 = arith.constant dense<0.000000e+00> : vector<16x128xf32>
    %10 = tpu.matmul %0, %9, %cst_9 {dimension_numbers = #tpu.dot_dimension_numbers<[1], [0], [0], [1], [0, 0, 1, 1], [], []>} : vector<16x256xbf16>, vector<256x128xbf16>, vector<16x128xf32> -> vector<16x128xf32>
    %c1_10 = arith.constant 1 : index
    %c0_11 = arith.constant 0 : index
    %c0_12 = arith.constant 0 : index
    %11 = vector.load %arg3[%c1_10, %c0_11, %c0_12] : memref<4x1x128xf32, #tpu.memory_space<vmem>>, vector<1x1x128xf32>
    %12 = vector.shape_cast %11 : vector<1x1x128xf32> to vector<1x128xf32>
    %13 = vector.broadcast %12 : vector<1x128xf32> to vector<16x128xf32>
    %14 = arith.addf %10, %13 : vector<16x128xf32>
    %c2 = arith.constant 2 : index
    %c0_13 = arith.constant 0 : index
    %c0_14 = arith.constant 0 : index
    %15 = vector.load %arg2[%c2, %c0_13, %c0_14] : memref<4x256x128xbf16, #tpu.memory_space<vmem>>, vector<1x256x128xbf16>
    %16 = vector.shape_cast %15 : vector<1x256x128xbf16> to vector<256x128xbf16>
    %cst_15 = arith.constant dense<0.000000e+00> : vector<16x128xf32>
    %17 = tpu.matmul %0, %16, %cst_15 {dimension_numbers = #tpu.dot_dimension_numbers<[1], [0], [0], [1], [0, 0, 1, 1], [], []>} : vector<16x256xbf16>, vector<256x128xbf16>, vector<16x128xf32> -> vector<16x128xf32>
    %c2_16 = arith.constant 2 : index
    %c0_17 = arith.constant 0 : index
    %c0_18 = arith.constant 0 : index
    %18 = vector.load %arg3[%c2_16, %c0_17, %c0_18] : memref<4x1x128xf32, #tpu.memory_space<vmem>>, vector<1x1x128xf32>
    %19 = vector.shape_cast %18 : vector<1x1x128xf32> to vector<1x128xf32>
    %20 = vector.broadcast %19 : vector<1x128xf32> to vector<16x128xf32>
    %21 = arith.addf %17, %20 : vector<16x128xf32>
    %c3 = arith.constant 3 : index
    %c0_19 = arith.constant 0 : index
    %c0_20 = arith.constant 0 : index
    %22 = vector.load %arg2[%c3, %c0_19, %c0_20] : memref<4x256x128xbf16, #tpu.memory_space<vmem>>, vector<1x256x128xbf16>
    %23 = vector.shape_cast %22 : vector<1x256x128xbf16> to vector<256x128xbf16>
    %cst_21 = arith.constant dense<0.000000e+00> : vector<16x128xf32>
    %24 = tpu.matmul %0, %23, %cst_21 {dimension_numbers = #tpu.dot_dimension_numbers<[1], [0], [0], [1], [0, 0, 1, 1], [], []>} : vector<16x256xbf16>, vector<256x128xbf16>, vector<16x128xf32> -> vector<16x128xf32>
    %c3_22 = arith.constant 3 : index
    %c0_23 = arith.constant 0 : index
    %c0_24 = arith.constant 0 : index
    %25 = vector.load %arg3[%c3_22, %c0_23, %c0_24] : memref<4x1x128xf32, #tpu.memory_space<vmem>>, vector<1x1x128xf32>
    %26 = vector.shape_cast %25 : vector<1x1x128xf32> to vector<1x128xf32>
    %27 = vector.broadcast %26 : vector<1x128xf32> to vector<16x128xf32>
    %28 = arith.addf %24, %27 : vector<16x128xf32>
    %29 = arith.negf %7 : vector<16x128xf32>
    %30 = math.exp %29 : vector<16x128xf32>
    %cst_25 = arith.constant 1.000000e+00 : f32
    %31 = vector.broadcast %cst_25 : f32 to vector<16x128xf32>
    %32 = arith.addf %31, %30 : vector<16x128xf32>
    %33 = arith.divf %31, %32 : vector<16x128xf32>
    %34 = arith.negf %14 : vector<16x128xf32>
    %35 = math.exp %34 : vector<16x128xf32>
    %cst_26 = arith.constant 1.000000e+00 : f32
    %36 = vector.broadcast %cst_26 : f32 to vector<16x128xf32>
    %37 = arith.addf %36, %35 : vector<16x128xf32>
    %38 = arith.divf %36, %37 : vector<16x128xf32>
    %39 = math.tanh %21 : vector<16x128xf32>
    %40 = arith.negf %28 : vector<16x128xf32>
    %41 = math.exp %40 : vector<16x128xf32>
    %cst_27 = arith.constant 1.000000e+00 : f32
    %42 = vector.broadcast %cst_27 : f32 to vector<16x128xf32>
    %43 = arith.addf %42, %41 : vector<16x128xf32>
    %44 = arith.divf %42, %43 : vector<16x128xf32>
    %c0_28 = arith.constant 0 : index
    %c0_29 = arith.constant 0 : index
    %45 = vector.load %arg4[%c0_28, %c0_29] : memref<16x128xf32, #tpu.memory_space<vmem>>, vector<16x128xf32>
    %46 = arith.mulf %38, %45 : vector<16x128xf32>
    %47 = arith.mulf %33, %39 : vector<16x128xf32>
    %48 = arith.addf %46, %47 : vector<16x128xf32>
    %49 = math.tanh %48 : vector<16x128xf32>
    %50 = arith.mulf %44, %49 : vector<16x128xf32>
    %c0_30 = arith.constant 0 : index
    %c0_31 = arith.constant 0 : index
    %51 = vector.load %arg5[%c0_30, %c0_31] : memref<16x128xf32, #tpu.memory_space<vmem>>, vector<16x128xf32>
    tpu.vector_store %arg5[%c0_30, %c0_31], %50 {strides = array<i32>} : memref<16x128xf32, #tpu.memory_space<vmem>>, vector<16x128xf32>,
    %c0_32 = arith.constant 0 : index
    %c0_33 = arith.constant 0 : index
    %52 = vector.load %arg6[%c0_32, %c0_33] : memref<16x128xf32, #tpu.memory_space<vmem>>, vector<16x128xf32>
    tpu.vector_store %arg6[%c0_32, %c0_33], %48 {strides = array<i32>} : memref<16x128xf32, #tpu.memory_space<vmem>>, vector<16x128xf32>,
    return
  }
  func.func @transform_0(%arg0: i32) -> (i32, i32) {
    %c0_i32 = arith.constant 0 : i32
    %c0_i32_0 = arith.constant 0 : i32
    %c0_i32_1 = arith.constant 0 : i32
    return %c0_i32, %c0_i32_0 : i32, i32
  }
  func.func @transform_1(%arg0: i32) -> (i32, i32, i32) {
    %c0_i32 = arith.constant 0 : i32
    %c0_i32_0 = arith.constant 0 : i32
    %c0_i32_1 = arith.constant 0 : i32
    return %c0_i32, %c0_i32_0, %arg0 : i32, i32, i32
  }
  func.func @transform_2(%arg0: i32) -> (i32, i32, i32) {
    %c0_i32 = arith.constant 0 : i32
    %c0_i32_0 = arith.constant 0 : i32
    %c0_i32_1 = arith.constant 0 : i32
    return %c0_i32, %c0_i32_0, %arg0 : i32, i32, i32
  }
  func.func @transform_3(%arg0: i32) -> (i32, i32) {
    %c0_i32 = arith.constant 0 : i32
    %c0_i32_0 = arith.constant 0 : i32
    return %c0_i32, %arg0 : i32, i32
  }
  func.func @transform_4(%arg0: i32) -> (i32, i32) {
    %c0_i32 = arith.constant 0 : i32
    %c0_i32_0 = arith.constant 0 : i32
    return %c0_i32, %arg0 : i32, i32
  }
  func.func @transform_5(%arg0: i32) -> (i32, i32) {
    %c0_i32 = arith.constant 0 : i32
    %c0_i32_0 = arith.constant 0 : i32
    return %c0_i32, %arg0 : i32, i32
  }
}

</mosaic_0001>

<bundles_post_ra>
// kernel: tpu_custom_call.1
= control target key start
LH: loop header
LB: loop body
LE: loop exit
PB: predicated region body
PF: predicated region fallthrough
CT: control target
= control target key end

     0   :  { %11 = vsyncpa [#allocation3], 0  ;;  %s1395_s0 = inlined_call_operand.hbm [shape: bf16[16,256], index: 0, kind: input, shape index: {}]   ;;  %s1396_s1 = inlined_call_operand.hbm [shape: bf16[4,256,128], index: 1, kind: input, shape index: {}]   ;;  %s1397_s2 = inlined_call_operand.vmem [shape: f32[4,1,128], index: 2, kind: input, shape index: {}]   ;;  %s1398_s3 = inlined_call_operand.hbm [shape: f32[16,128], index: 3, kind: input, shape index: {}]   ;;  %s1399_s4 = inlined_call_operand.hbm [shape: f32[16,128], index: 4, kind: output, shape index: {0}]   ;;  %s1400_s5 = inlined_call_operand.hbm [shape: f32[16,128], index: 5, kind: output, shape index: {1}]  }
   0x1   :  { %12 = vsyncpa [#allocation6], 0 }
   0x2   :  { %13 = vsyncpa [#allocation4], 0 }
   0x3   :  { %14 = vsyncpa [#allocation10], 0  ;;  %s1266_s18 = smov [#allocation5]   ;;  %s1148_s22 = scalar_lea.hbm %s1396_s1, 8192 }
   0x4   :  { %s32_s19 = sshll.u32 %s1266_s18, 4  ;;  %p1149_p0 = scmp.ne.s32.totalorder %s1396_s1, %s1148_s22  ;;  %s33_s19 = int_to_ptr.vmem [resolvable:$true] %s32_s19 }
   0x5   :  { %p1152_p1 = scmp.lt.u32.totalorder %s1148_s22, %s1396_s1 }
   0x7   :  { %p1154_p2 = pnand %p1152_p1, %p1149_p0 }
   0x9   :  { %1157 = shalt.err (!%p1154_p2)
}
   0xa   :  { %s1158_s27 = scalar_lea.vmem %s33_s19, 8192  ;;  %p1163_p4 = scmp.lt.s32.totalorder %s33_s19, %s33_s19 }
   0xb   :  { %p1159_p3 = scmp.ne.s32.totalorder %s33_s19, %s1158_s27  ;;  %p1164_p5 = scmp.lt.s32.totalorder %s1158_s27, %s1158_s27 }
   0xd   :  { %p1165_p6 = por %p1164_p5, %p1163_p4 }
   0xf   :  { %p1166_p7 = pnand %p1165_p6, %p1159_p3 }
  0x11   :  { %1169 = shalt.err (!%p1166_p7)
}
  0x12   :  { %s1267_s28 = smov 64   ;;  %s1268_s29 = smov 4  }
  0x13   :  { %38 = dma.hbm_to_vmem [thread:$0]  %s1396_s1, 8192, %s33_s19, [#allocation6], %s1267_s28, %s1267_s28, %s1268_s29  }
  0x14   :  { %s1269_s7 = smov [#allocation2]   ;;  %s1170_s11 = scalar_lea.hbm %s1395_s0, 256 }
  0x15   :  { %s20_s8 = sshll.u32 %s1269_s7, 4  ;;  %p1171_p8 = scmp.ne.s32.totalorder %s1395_s0, %s1170_s11  ;;  %s21_s8 = int_to_ptr.vmem [resolvable:$true] %s20_s8 }
  0x16   :  { %p1174_p9 = scmp.lt.u32.totalorder %s1170_s11, %s1395_s0 }
  0x18   :  { %p1176_p10 = pnand %p1174_p9, %p1171_p8 }
  0x1a   :  { %1179 = shalt.err (!%p1176_p10)
}
  0x1b   :  { %s1180_s16 = scalar_lea.vmem %s21_s8, 256  ;;  %p1185_p12 = scmp.lt.s32.totalorder %s21_s8, %s21_s8 }
  0x1c   :  { %p1181_p11 = scmp.ne.s32.totalorder %s21_s8, %s1180_s16  ;;  %p1186_p13 = scmp.lt.s32.totalorder %s1180_s16, %s1180_s16 }
  0x1e   :  { %p1187_p0 = por %p1186_p13, %p1185_p12 }
  0x20   :  { %p1188_p1 = pnand %p1187_p0, %p1181_p11 }
  0x22   :  { %1191 = shalt.err (!%p1188_p1)
}
  0x23   :  { %s1270_s1 = smov 128   ;;  %s1271_s17 = smov 8  }
  0x24   :  { %26 = dma.hbm_to_vmem [thread:$0]  %s1395_s0, 256, %s21_s8, [#allocation3], %s1270_s1, %s1270_s1, %s1271_s17  }
  0x25   :  { %s1272_s20 = smov [#allocation7]   ;;  %s1192_s24 = scalar_lea.hbm %s1398_s3, 256 }
  0x26   :  { %s46_s21 = sshll.u32 %s1272_s20, 4  ;;  %p1193_p2 = scmp.ne.s32.totalorder %s1398_s3, %s1192_s24  ;;  %s47_s21 = int_to_ptr.vmem [resolvable:$true] %s46_s21 }
  0x27   :  { %p1196_p3 = scmp.lt.u32.totalorder %s1192_s24, %s1398_s3 }
  0x29   :  { %p1198_p4 = pnand %p1196_p3, %p1193_p2 }
  0x2b   :  { %1201 = shalt.err (!%p1198_p4)
}
  0x2c   :  { %s1202_s29 = scalar_lea.vmem %s47_s21, 256  ;;  %p1207_p6 = scmp.lt.s32.totalorder %s47_s21, %s47_s21 }
  0x2d   :  { %p1203_p5 = scmp.ne.s32.totalorder %s47_s21, %s1202_s29  ;;  %p1208_p7 = scmp.lt.s32.totalorder %s1202_s29, %s1202_s29 }
  0x2f   :  { %p1209_p8 = por %p1208_p7, %p1207_p6 }
  0x31   :  { %p1210_p9 = pnand %p1209_p8, %p1203_p5 }
  0x33   :  { %1213 = shalt.err (!%p1210_p9)
}
  0x34   :  { %52 = dma.hbm_to_vmem [thread:$0]  %s1398_s3, 256, %s47_s21, [#allocation6], %s1270_s1, %s1270_s1, %s1271_s17  }
  0x35   :  { %1258 = dma.done.wait [#allocation3], 256  }
  0x36   :  { %1259 = vsyncadd [#allocation3], 4294967040 }
  0x37   :  { %1260 = dma.done.wait [#allocation6], 8448  }
  0x38   :  { %1261 = vsyncadd [#allocation6], 4294958848  ;;  %v1049_v0 = vld [vmem:[#allocation5 + $0x40] sm:$0xff]   ;;  %v1053_v4 = vld [vmem:[#allocation5 + $0x48] sm:$0xff]  }
  0x39   :  { %v1050_v1 = vld [vmem:[#allocation5 + $0xc0] sm:$0xff]   ;;  %952 = vmatprep.subr.bf16.mxu0 %v1049_v0  ;;  %v1054_v5 = vld [vmem:[#allocation5 + $0xc8] sm:$0xff]   ;;  %v1057_v8 = vld [vmem:[#allocation5 + $0x50] sm:$0xff]  }
  0x3a   :  { %v1051_v2 = vld [vmem:[#allocation5] sm:$0xff]   ;;  %974 = vmatprep.subr.bf16.mxu1 %v1050_v1  ;;  %v1055_v6 = vld [vmem:[#allocation5 + $0x8] sm:$0xff]   ;;  %v1058_v9 = vld [vmem:[#allocation5 + $0xd0] sm:$0xff]  }
  0x3b   :  { %v1052_v3 = vld [vmem:[#allocation5 + $0x80] sm:$0xff]   ;;  %953 = vmatpush3.bf16.msra.mxu0 %v1051_v2  ;;  %v1056_v7 = vld [vmem:[#allocation5 + $0x88] sm:$0xff]   ;;  %v1059_v10 = vld [vmem:[#allocation5 + $0x10] sm:$0xff]  }
  0x3c   :  { %975 = vmatpush3.bf16.msra.mxu1 %v1052_v3  ;;  %954 = vmatprep.subr.bf16.mxu0 %v1053_v4  ;;  %v1060_v11 = vld [vmem:[#allocation5 + $0x90] sm:$0xff]   ;;  %v1061_v12 = vld [vmem:[#allocation5 + $0x58] sm:$0xff]   ;;  %v1065_v16 = vld [vmem:[#allocation5 + $0x60] sm:$0xff]  }
  0x3d   :  { %976 = vmatprep.subr.bf16.mxu1 %v1054_v5  ;;  %v1062_v13 = vld [vmem:[#allocation5 + $0xd8] sm:$0xff]   ;;  %v1066_v17 = vld [vmem:[#allocation5 + $0xe0] sm:$0xff]   ;;  %v1069_v20 = vld [vmem:[#allocation5 + $0x68] sm:$0xff]  }
  0x3e   :  { %v1063_v14 = vld [vmem:[#allocation5 + $0x18] sm:$0xff]   ;;  %v1067_v18 = vld [vmem:[#allocation5 + $0x20] sm:$0xff]   ;;  %v1070_v21 = vld [vmem:[#allocation5 + $0xe8] sm:$0xff]  }
  0x3f   :  { %955 = vmatpush3.bf16.msra.mxu0 %v1055_v6  ;;  %v1064_v15 = vld [vmem:[#allocation5 + $0x98] sm:$0xff]   ;;  %v1068_v19 = vld [vmem:[#allocation5 + $0xa0] sm:$0xff]   ;;  %v1071_v22 = vld [vmem:[#allocation5 + $0x28] sm:$0xff]  }
  0x40   :  { %977 = vmatpush3.bf16.msra.mxu1 %v1056_v7  ;;  %956 = vmatprep.subr.bf16.mxu0 %v1057_v8  ;;  %v1072_v23 = vld [vmem:[#allocation5 + $0xa8] sm:$0xff]   ;;  %v1073_v24 = vld [vmem:[#allocation5 + $0x70] sm:$0xff]   ;;  %v1077_v28 = vld [vmem:[#allocation5 + $0x78] sm:$0xff]  }
  0x41   :  { %978 = vmatprep.subr.bf16.mxu1 %v1058_v9  ;;  %v1074_v25 = vld [vmem:[#allocation5 + $0xf0] sm:$0xff]   ;;  %v1078_v29 = vld [vmem:[#allocation5 + $0xf8] sm:$0xff]   ;;  %v1084_v34 = vld [vmem:[#allocation5 + $0x140] sm:$0xff]  }
  0x42   :  { %v1075_v26 = vld [vmem:[#allocation5 + $0x30] sm:$0xff]   ;;  %v1079_v30 = vld [vmem:[#allocation5 + $0x38] sm:$0xff]   ;;  %v1085_v35 = vld [vmem:[#allocation5 + $0x1c0] sm:$0xff]  }
  0x43   :  { %957 = vmatpush3.bf16.msra.mxu0 %v1059_v10  ;;  %v1076_v27 = vld [vmem:[#allocation5 + $0xb0] sm:$0xff]   ;;  %v1080_v31 = vld [vmem:[#allocation5 + $0xb8] sm:$0xff]   ;;  %v1086_v36 = vld [vmem:[#allocation5 + $0x100] sm:$0xff]  }
  0x44   :  { %979 = vmatpush3.bf16.msra.mxu1 %v1060_v11  ;;  %958 = vmatprep.subr.bf16.mxu0 %v1061_v12  ;;  %v1081_v32 = vld [vmem:[#allocation2 + $0x4] ss:$8 sps:$4 sm:$0xff]   ;;  %v1347_v33 = vld [vmem:[#allocation2] ss:$8 sps:$4 sm:$0xff]   ;;  %v1087_v37 = vld [vmem:[#allocation5 + $0x180] sm:$0xff]  }
  0x45   :  { %980 = vmatprep.subr.bf16.mxu1 %v1062_v13  ;;  %242 = vmatprep.mubr.bf16.mxu0 %v1081_v32  ;;  %v1088_v38 = vld [vmem:[#allocation5 + $0x148] sm:$0xff]   ;;  %v1092_v42 = vld [vmem:[#allocation5 + $0x150] sm:$0xff]   ;;  %v1096_v46 = vld [vmem:[#allocation5 + $0x158] sm:$0xff]  }
  0x46   :  { %420 = vmatprep.mubr.bf16.mxu1 %v1081_v32  ;;  %v1089_v39 = vld [vmem:[#allocation5 + $0x1c8] sm:$0xff]   ;;  %v1093_v43 = vld [vmem:[#allocation5 + $0x1d0] sm:$0xff]   ;;  %v1097_v47 = vld [vmem:[#allocation5 + $0x1d8] sm:$0xff]  }
  0x47   :  { %959 = vmatpush3.bf16.msra.mxu0 %v1063_v14  ;;  %v1090_v40 = vld [vmem:[#allocation5 + $0x108] sm:$0xff]   ;;  %v1094_v44 = vld [vmem:[#allocation5 + $0x110] sm:$0xff]   ;;  %v1098_v48 = vld [vmem:[#allocation5 + $0x118] sm:$0xff]  }
  0x48   :  { %981 = vmatpush3.bf16.msra.mxu1 %v1064_v15  ;;  %960 = vmatprep.subr.bf16.mxu0 %v1065_v16  ;;  %v1091_v41 = vld [vmem:[#allocation5 + $0x188] sm:$0xff]   ;;  %v1095_v45 = vld [vmem:[#allocation5 + $0x190] sm:$0xff]   ;;  %v1099_v49 = vld [vmem:[#allocation5 + $0x198] sm:$0xff]  }
  0x49   :  { %982 = vmatprep.subr.bf16.mxu1 %v1066_v17  ;;  %v1100_v50 = vld [vmem:[#allocation5 + $0x160] sm:$0xff]   ;;  %v1104_v54 = vld [vmem:[#allocation5 + $0x168] sm:$0xff]   ;;  %v1108_v58 = vld [vmem:[#allocation5 + $0x170] sm:$0xff]  }
  0x4a   :  { %v1101_v51 = vld [vmem:[#allocation5 + $0x1e0] sm:$0xff]   ;;  %v1105_v55 = vld [vmem:[#allocation5 + $0x1e8] sm:$0xff]   ;;  %v1109_v59 = vld [vmem:[#allocation5 + $0x1f0] sm:$0xff]  }
  0x4b   :  { %961 = vmatpush3.bf16.msra.mxu0 %v1067_v18  ;;  %v1102_v52 = vld [vmem:[#allocation5 + $0x120] sm:$0xff]   ;;  %v1106_v56 = vld [vmem:[#allocation5 + $0x128] sm:$0xff]   ;;  %v1110_v60 = vld [vmem:[#allocation5 + $0x130] sm:$0xff]  }
  0x4c   :  { %983 = vmatpush3.bf16.msra.mxu1 %v1068_v19  ;;  %962 = vmatprep.subr.bf16.mxu0 %v1069_v20  ;;  %v1103_v53 = vld [vmem:[#allocation5 + $0x1a0] sm:$0xff]   ;;  %v1107_v57 = vld [vmem:[#allocation5 + $0x1a8] sm:$0xff]   ;;  %v1111_v61 = vld [vmem:[#allocation5 + $0x1b0] sm:$0xff]  }
  0x4d   :  { %984 = vmatprep.subr.bf16.mxu1 %v1070_v21  ;;  %v1112_v62 = vld [vmem:[#allocation5 + $0x178] sm:$0xff]   ;;  %v873_v14 = vld [vmem:[%s1397_s2] ss:$0 sm:$0xff]  ;;  %v893_v15 = vld [vmem:[%s1397_s2 + $0x1] ss:$0 sm:$0xff] }
  0x4e   :  { %v1113_v63 = vld [vmem:[#allocation5 + $0x1f8] sm:$0xff]  }
  0x4f   :  { %963 = vmatpush3.bf16.msra.mxu0 %v1071_v22  ;;  %v1114_v0 = vld [vmem:[#allocation5 + $0x138] sm:$0xff]  }
  0x50   :  { %985 = vmatpush3.bf16.msra.mxu1 %v1072_v23  ;;  %964 = vmatprep.subr.bf16.mxu0 %v1073_v24  ;;  %v1115_v1 = vld [vmem:[#allocation5 + $0x1b8] sm:$0xff]  }
  0x51   :  { %986 = vmatprep.subr.bf16.mxu1 %v1074_v25 }
  0x53   :  { %965 = vmatpush3.bf16.msra.mxu0 %v1075_v26 }
  0x54   :  { %987 = vmatpush3.bf16.msra.mxu1 %v1076_v27  ;;  %966 = vmatprep.subr.bf16.mxu0 %v1077_v28 }
  0x55   :  { %988 = vmatprep.subr.bf16.mxu1 %v1078_v29 }
  0x57   :  { %967 = vmatpush3.bf16.msra.mxu0 %v1079_v30 }
  0x58   :  { %989 = vmatpush3.bf16.msra.mxu1 %v1080_v31  ;;  %996 = vmatprep.subr.bf16.mxu0 %v1084_v34 }
  0x59   :  { %1018 = vmatprep.subr.bf16.mxu1 %v1085_v35 }
  0x5a   :  { %243 = vmatmul.mubr.bf16.vlgmr.msra.gmra.mrb[0].mxu0 %v1347_v33 }
  0x5b   :  { %421 = vmatmul.mubr.bf16.vlgmr.msra.gmra.mrb[0].mxu1 %v1347_v33  ;;  %598 = vmatprep.mubr.bf16.mxu0 %v1081_v32 }
  0x5c   :  { %997 = vmatpush3.bf16.msra.mxu0 %v1086_v36  ;;  %776 = vmatprep.mubr.bf16.mxu1 %v1081_v32  ;;  %v929_v36 = vld [vmem:[%s1397_s2 + $0x3] ss:$0 sm:$0xff] }
  0x5d   :  { %1019 = vmatpush3.bf16.msra.mxu1 %v1087_v37  ;;  %998 = vmatprep.subr.bf16.mxu0 %v1088_v38 }
  0x5e   :  { %1020 = vmatprep.subr.bf16.mxu1 %v1089_v39 }
  0x60   :  { %999 = vmatpush3.bf16.msra.mxu0 %v1090_v40 }
  0x61   :  { %1021 = vmatpush3.bf16.msra.mxu1 %v1091_v41  ;;  %1000 = vmatprep.subr.bf16.mxu0 %v1092_v42 }
  0x62   :  { %1022 = vmatprep.subr.bf16.mxu1 %v1093_v43 }
  0x64   :  { %1001 = vmatpush3.bf16.msra.mxu0 %v1094_v44 }
  0x65   :  { %1023 = vmatpush3.bf16.msra.mxu1 %v1095_v45  ;;  %1002 = vmatprep.subr.bf16.mxu0 %v1096_v46 }
  0x66   :  { %1024 = vmatprep.subr.bf16.mxu1 %v1097_v47 }
  0x68   :  { %1003 = vmatpush3.bf16.msra.mxu0 %v1098_v48 }
  0x69   :  { %1025 = vmatpush3.bf16.msra.mxu1 %v1099_v49  ;;  %1004 = vmatprep.subr.bf16.mxu0 %v1100_v50 }
  0x6a   :  { %1026 = vmatprep.subr.bf16.mxu1 %v1101_v51 }
  0x6c   :  { %1005 = vmatpush3.bf16.msra.mxu0 %v1102_v52 }
  0x6d   :  { %1027 = vmatpush3.bf16.msra.mxu1 %v1103_v53  ;;  %1006 = vmatprep.subr.bf16.mxu0 %v1104_v54  ;;  %v823_v54 = vld [vmem:[#allocation7] sm:$0xff] }
  0x6e   :  { %1028 = vmatprep.subr.bf16.mxu1 %v1105_v55 }
  0x70   :  { %1007 = vmatpush3.bf16.msra.mxu0 %v1106_v56 }
  0x71   :  { %1029 = vmatpush3.bf16.msra.mxu1 %v1107_v57  ;;  %1008 = vmatprep.subr.bf16.mxu0 %v1108_v58  ;;  %v824_v57 = vld [vmem:[#allocation7 + $0x8] sm:$0xff] }
  0x72   :  { %1030 = vmatprep.subr.bf16.mxu1 %v1109_v59 }
  0x74   :  { %1009 = vmatpush3.bf16.msra.mxu0 %v1110_v60 }
  0x75   :  { %1031 = vmatpush3.bf16.msra.mxu1 %v1111_v61  ;;  %1010 = vmatprep.subr.bf16.mxu0 %v1112_v62 }
  0x76   :  { %1032 = vmatprep.subr.bf16.mxu1 %v1113_v63 }
  0x78   :  { %1011 = vmatpush3.bf16.msra.mxu0 %v1114_v0 }
  0x79   :  { %1033 = vmatpush3.bf16.msra.mxu1 %v1115_v1 }
  0x7b   :  { %599 = vmatmul.mubr.bf16.vlgmr.msra.gmra.mrb[4].mxu0 %v1347_v33 }
  0x7c   :  { %777 = vmatmul.mubr.bf16.vlgmr.msra.gmra.mrb[4].mxu1 %v1347_v33  ;;  %v911_v33 = vld [vmem:[%s1397_s2 + $0x2] ss:$0 sm:$0xff]  ;;  %s1273_s2 = smov [#allocation9]  }
  0x7d   :  { %s856_s13 = sshll.u32 %s1273_s2, 4  ;;  %s857_s13 = int_to_ptr.vmem [resolvable:$true] %s856_s13 }
  0x7e   :  { %s1214_s14 = scalar_lea.vmem %s857_s13, 256  ;;  %p1219_p11 = scmp.lt.s32.totalorder %s857_s13, %s857_s13 }
  0x7f   :  { %p1215_p10 = scmp.ne.s32.totalorder %s857_s13, %s1214_s14  ;;  %p1220_p12 = scmp.lt.s32.totalorder %s1214_s14, %s1214_s14 }
  0x81   :  { %p1221_p13 = por %p1220_p12, %p1219_p11 }
  0x83   :  { %p1222_p0 = pnand %p1221_p13, %p1215_p10 }
 0x12d   :  { %v968_v2 = vpop.f32.mrb[0].mxu0 }
 0x12e   :  { %v990_v3 = vpop.f32.mrb[0].mxu1  ;;  %v969_v4 = vpop.f32.mrb[1].mxu0 }
 0x12f   :  { %v970_v5 = vadd.f32 %v969_v4, %v968_v2  ;;  %v991_v6 = vpop.f32.mrb[1].mxu1  ;;  %v971_v7 = vpop.f32.mrb[2].mxu0 }
 0x130   :  { %v992_v8 = vadd.f32 %v991_v6, %v990_v3  ;;  %v993_v9 = vpop.f32.mrb[2].mxu1  ;;  %v972_v10 = vpop.f32.mrb[3].mxu0 }
 0x131   :  { %v973_v11 = vadd.f32 %v972_v10, %v971_v7  ;;  %v994_v12 = vpop.f32.mrb[3].mxu1  ;;  %v245_v16 = vadd.f32 %v970_v5, %v873_v14 }
 0x132   :  { %v995_v13 = vadd.f32 %v994_v12, %v993_v9  ;;  %v423_v17 = vadd.f32 %v992_v8, %v893_v15 }
 0x133   :  { %v946_v19 = vmul.f32 -1.442695, %v245_v16  ;;  %v248_v20 = vadd.f32 %v973_v11, %v873_v14 }
 0x134   :  { %v426_v18 = vadd.f32 %v995_v13, %v893_v15  ;;  %v948_v21 = vmul.f32 -1.442695, %v423_v17 }
 0x135   :  { %1116 = vpow2.f32 %v946_v19  ;;  %v947_v23 = vmul.f32 -1.442695, %v248_v20 }
 0x136   :  { %v949_v22 = vmul.f32 -1.442695, %v426_v18  ;;  %1118 = vpow2.f32 %v948_v21 }
 0x138   :  { %1120 = vpow2.f32 %v949_v22 }
 0x139   :  { %1122 = vpow2.f32 %v947_v23 }
 0x13f   :  { %v1117_v24 = vpop.eup %1116 }
 0x140   :  { %v1119_v25 = vpop.eup %1118  ;;  %v791_v27 = vadd.f32 1.0, %v1117_v24 }
 0x141   :  { %v803_v29 = vadd.f32 1.0, %v1119_v25 }
 0x142   :  { %v1121_v26 = vpop.eup %1120  ;;  %1124 = vrcp.f32 %v791_v27 }
 0x143   :  { %v1123_v28 = vpop.eup %1122  ;;  %v804_v31 = vadd.f32 1.0, %v1121_v26  ;;  %1126 = vrcp.f32 %v803_v29 }
 0x144   :  { %v792_v39 = vadd.f32 1.0, %v1123_v28 }
 0x145   :  { %1128 = vrcp.f32 %v804_v31 }
 0x14c   :  { %v1125_v52 = vpop.eup %1124 }
 0x14d   :  { %v1127_v53 = vpop.eup %1126 }
 0x14e   :  { %v1012_v30 = vpop.f32.mrb[4].mxu0  ;;  %v825_v59 = vmul.f32 %v1127_v53, %v823_v54 }
 0x14f   :  { %v1034_v32 = vpop.f32.mrb[4].mxu1  ;;  %v1013_v34 = vpop.f32.mrb[5].mxu0 }
 0x150   :  { %v1014_v35 = vadd.f32 %v1013_v34, %v1012_v30  ;;  %v1035_v37 = vpop.f32.mrb[5].mxu1  ;;  %v1015_v38 = vpop.f32.mrb[6].mxu0 }
 0x151   :  { %v1036_v40 = vadd.f32 %v1035_v37, %v1034_v32  ;;  %v1037_v41 = vpop.f32.mrb[6].mxu1  ;;  %v1016_v42 = vpop.f32.mrb[7].mxu0 }
 0x152   :  { %v601_v43 = vadd.f32 %v1014_v35, %v911_v33  ;;  %v1017_v44 = vadd.f32 %v1016_v42, %v1015_v38  ;;  %v1038_v45 = vpop.f32.mrb[7].mxu1  ;;  %v1129_v55 = vpop.eup %1128 }
 0x153   :  { %v779_v46 = vadd.f32 %v1036_v40, %v929_v36  ;;  %v1039_v47 = vadd.f32 %v1038_v45, %v1037_v41  ;;  %v826_v63 = vmul.f32 %v1129_v55, %v824_v57 }
 0x154   :  { %1130 = vtanh.f32 %v601_v43  ;;  %v604_v48 = vadd.f32 %v1017_v44, %v911_v33 }
 0x155   :  { %1132 = vrcp.f32 %v792_v39  ;;  %v950_v49 = vmul.f32 -1.442695, %v779_v46  ;;  %v782_v50 = vadd.f32 %v1039_v47, %v929_v36 }
 0x156   :  { %1134 = vtanh.f32 %v604_v48 }
 0x157   :  { %1136 = vpow2.f32 %v950_v49  ;;  %v951_v51 = vmul.f32 -1.442695, %v782_v50 }
 0x159   :  { %1138 = vpow2.f32 %v951_v51 }
 0x15e   :  { %v1131_v56 = vpop.eup %1130 }
 0x15f   :  { %v1133_v58 = vpop.eup %1132  ;;  %v827_v60 = vmul.f32 %v1131_v56, %v1125_v52 }
 0x160   :  { %v1135_v61 = vpop.eup %1134 }
 0x161   :  { %v1137_v62 = vpop.eup %1136  ;;  %v829_v0 = vadd.f32 %v827_v60, %v825_v59  ;;  %v828_v1 = vmul.f32 %v1135_v61, %v1133_v58 }
 0x162   :  { %v817_v2 = vadd.f32 1.0, %v1137_v62 }
 0x163   :  { %v1139_v3 = vpop.eup %1138  ;;  %837 = vst [vmem:[#allocation9] sm:$0xff] %v829_v0  ;;  %v830_v4 = vadd.f32 %v828_v1, %v826_v63  ;;  %1140 = vtanh.f32 %v829_v0 }
 0x164   :  { %1142 = vrcp.f32 %v817_v2  ;;  %v818_v5 = vadd.f32 1.0, %v1139_v3 }
 0x165   :  { %838 = vst [vmem:[#allocation9 + $0x8] sm:$0xff] %v830_v4  ;;  %1144 = vtanh.f32 %v830_v4 }
 0x166   :  { %1146 = vrcp.f32 %v818_v5 }
 0x167   :  { %1225 = shalt.err (!%p1222_p0)
}
 0x168   :  { %s1226_s18 = scalar_lea.hbm %s1400_s5, 256 }
 0x169   :  { %p1227_p1 = scmp.ne.s32.totalorder %s1400_s5, %s1226_s18  ;;  %p1230_p2 = scmp.lt.u32.totalorder %s1226_s18, %s1400_s5 }
 0x16b   :  { %p1232_p3 = pnand %p1230_p2, %p1227_p1 }
 0x16d   :  { %1235 = shalt.err (!%p1232_p3)
}
 0x16e   :  { %862 = dma.vmem_to_hbm [thread:$0]  %s857_s13, 256, %s1400_s5, [#allocation10], %s1270_s1, %s1270_s1, %s1271_s17   ;;  %v1141_v6 = vpop.eup %1140 }
 0x16f   :  { %v1143_v7 = vpop.eup %1142  ;;  %s1274_s25 = smov [#allocation8]  }
 0x170   :  { %s844_s26 = sshll.u32 %s1274_s25, 4  ;;  %v1145_v8 = vpop.eup %1144  ;;  %v833_v9 = vmul.f32 %v1143_v7, %v1141_v6  ;;  %s845_s26 = int_to_ptr.vmem [resolvable:$true] %s844_s26 }
 0x171   :  { %v1147_v10 = vpop.eup %1146  ;;  %s1236_s27 = scalar_lea.vmem %s845_s26, 256  ;;  %p1241_p5 = scmp.lt.s32.totalorder %s845_s26, %s845_s26 }
 0x172   :  { %v834_v11 = vmul.f32 %v1147_v10, %v1145_v8  ;;  %835 = vst [vmem:[#allocation8] sm:$0xff] %v833_v9  ;;  %p1237_p4 = scmp.ne.s32.totalorder %s845_s26, %s1236_s27  ;;  %p1242_p6 = scmp.lt.s32.totalorder %s1236_s27, %s1236_s27 }
 0x174   :  { %836 = vst [vmem:[#allocation8 + $0x8] sm:$0xff] %v834_v11  ;;  %p1243_p7 = por %p1242_p6, %p1241_p5 }
 0x176   :  { %p1244_p8 = pnand %p1243_p7, %p1237_p4 }
 0x178   :  { %1247 = shalt.err (!%p1244_p8)
}
 0x179   :  { %s1248_s29 = scalar_lea.hbm %s1399_s4, 256 }
 0x17a   :  { %p1249_p9 = scmp.ne.s32.totalorder %s1399_s4, %s1248_s29  ;;  %p1252_p10 = scmp.lt.u32.totalorder %s1248_s29, %s1399_s4 }
 0x17c   :  { %p1254_p11 = pnand %p1252_p10, %p1249_p9 }
 0x17e   :  { %1257 = shalt.err (!%p1254_p11)
}
 0x17f   :  { %850 = dma.vmem_to_hbm [thread:$0]  %s845_s26, 256, %s1399_s4, [#allocation4], %s1270_s1, %s1270_s1, %s1271_s17  }
 0x180   :  { %1262 = dma.done.wait [#allocation4], 256  }
 0x181   :  { %1263 = vsyncadd [#allocation4], 4294967040 }
 0x182   :  { %1264 = dma.done.wait [#allocation10], 256  }
 0x183   :  { %1265 = vsyncadd [#allocation10], 4294967040 }
 0x184   :  { %869 = vsyncpa [#allocation3], 1 }
 0x185   :  { %870 = vsyncpa [#allocation6], 1 }
 0x186   :  { %871 = vsyncpa [#allocation4], 1 }
 0x187   :  { %872 = vsyncpa [#allocation10], 1 }

</bundles_post_ra>
